<compile_context>
chip_gen: v7x
topology: tpu7x:2x2x1
jax: 0.10.0
libtpu: 0.0.40
codegen_flags: <defaults>
</compile_context>

<pallas_src>
import jax
import jax.numpy as jnp
from jax import lax
from jax.experimental import pallas as pl
from jax.experimental.pallas import tpu as pltpu

BN_EPS = 1e-5
LANE = 128
SUBLANE = 8


def _round_up(n, m):
    return ((n + m - 1) // m) * m


def _bn_relu(z, gamma, beta):
    """Train-mode BatchNorm1d (batch stats, biased var) + ReLU, folded to scale/shift.

    One-sweep moments: mean = E[z], var = E[z^2] - mean^2.
    """
    inv_b = 1.0 / z.shape[0]
    mean = jnp.sum(z, axis=0, keepdims=True) * inv_b          # (1, H)
    ex2 = jnp.sum(z * z, axis=0, keepdims=True) * inv_b       # (1, H)
    var = ex2 - mean * mean                                   # biased variance
    s = gamma * lax.rsqrt(var + BN_EPS)                       # rsqrt -> EUP slot
    t = beta - s * mean
    return jnp.maximum(z * s + t, 0.0)                        # 2 VPU ops on [B, H]


def _make_kernel(output_dim, mxu_dtype):
    def kernel(x_ref, w1_ref, w2_ref, w3_ref, aux_ref, o_ref):
        # Packed per-feature parameters (single DMA): rows = g1, be1, g2, be2, b3.
        # Full-row (lane-dense) loads; padded entries are zeros.
        g1 = aux_ref[0:1, :]
        be1 = aux_ref[1:2, :]
        g2 = aux_ref[2:3, :]
        be2 = aux_ref[3:4, :]
        b3 = aux_ref[4:5, :][:, :output_dim]                  # value-level slice

        x = x_ref[...].astype(mxu_dtype)                      # MXU-boundary cast only

        # input_layer: Linear (bias cancels inside batch-stat BN) -> BN -> ReLU
        z1 = jnp.dot(x, w1_ref[...], preferred_element_type=jnp.float32)
        h1 = _bn_relu(z1, g1, be1)                            # f32 elementwise

        # hidden_layer: Linear -> BN -> ReLU
        z2 = jnp.dot(h1.astype(mxu_dtype), w2_ref[...],
                     preferred_element_type=jnp.float32)
        h2 = _bn_relu(z2, g2, be2)

        # residual add + output Linear (direct [B, output_dim] store)
        h = (h1 + h2).astype(mxu_dtype)
        y = jnp.dot(h, w3_ref[...], preferred_element_type=jnp.float32) + b3
        o_ref[...] = y.astype(o_ref.dtype)

    return kernel


def prepare_params(params, mxu_dtype=jnp.bfloat16):
    """One-time pad/pack of parameters (hoisted out of the per-forward hot path)."""
    w1, w2, w3 = params["w1"], params["w2"], params["w3"]
    input_dim, hidden_dim = w1.shape
    output_dim = w3.shape[1]
    hp = _round_up(hidden_dim, LANE)                          # lane-dense hidden width
    f32 = jnp.float32

    # Zero-padding keeps the math exact: padded hidden features get gamma=beta=0,
    # so BN+ReLU maps them to 0, and padded w2/w3 rows contribute nothing.
    w1p = jnp.zeros((input_dim, hp), f32).at[:, :hidden_dim].set(w1)
    w2p = jnp.zeros((hp, hp), f32).at[:hidden_dim, :hidden_dim].set(w2)
    w3p = jnp.zeros((hp, output_dim), f32).at[:hidden_dim, :].set(w3)

    # Pack all tiny per-feature vectors into one (8, hp) array -> one DMA descriptor.
    aux = jnp.zeros((SUBLANE, hp), f32)
    aux = aux.at[0, :hidden_dim].set(params["g1"].reshape(-1))
    aux = aux.at[1, :hidden_dim].set(params["be1"].reshape(-1))
    aux = aux.at[2, :hidden_dim].set(params["g2"].reshape(-1))
    aux = aux.at[3, :hidden_dim].set(params["be2"].reshape(-1))
    aux = aux.at[4, :output_dim].set(params["b3"].reshape(-1))

    # NOTE: b1/b2 are intentionally NOT included -- a Linear bias followed by
    # train-mode (batch-statistics) BatchNorm cancels exactly.  This is only
    # valid for train-mode semantics; eval-mode (running stats) would need them.
    return dict(
        w1=w1p.astype(mxu_dtype),
        w2=w2p.astype(mxu_dtype),
        w3=w3p.astype(mxu_dtype),
        aux=aux,                                              # BN/bias math stays f32
    )


@jax.jit
def fiber_optic_fnn5(x, prepared):
    """x: [B, input_dim] float32.  prepared: output of prepare_params()."""
    B, input_dim = x.shape
    w1p, w2p, w3p, aux = prepared["w1"], prepared["w2"], prepared["w3"], prepared["aux"]
    hp = w1p.shape[1]
    output_dim = w3p.shape[1]
    mxu_dtype = w1p.dtype

    # Explicit scoped-VMEM budget (default 16/32 MiB is far below physical).
    w_itemsize = jnp.dtype(mxu_dtype).itemsize
    weight_bytes = (w1p.size + w2p.size + w3p.size) * w_itemsize
    io_bytes = (x.size + aux.size + B * output_dim) * 4
    live_bytes = 6 * B * hp * 4                               # z1/h1, z2/h2, h, casts
    vmem_limit = int(min(64 << 20,                            # v7x physical ceiling
                         max(32 << 20,
                             2 * (weight_bytes + io_bytes) + live_bytes + (4 << 20))))

    cost = pl.CostEstimate(
        flops=2 * B * (input_dim * hp + hp * hp + hp * output_dim),
        transcendentals=2 * hp,                               # two rsqrt rows
        bytes_accessed=weight_bytes + io_bytes,
    )

    vmem = pl.BlockSpec(memory_space=pltpu.MemorySpace.VMEM)
    return pl.pallas_call(
        _make_kernel(output_dim, mxu_dtype),
        out_shape=jax.ShapeDtypeStruct((B, output_dim), jnp.float32),
        in_specs=[vmem] * 5,
        out_specs=vmem,
        compiler_params=pltpu.CompilerParams(vmem_limit_bytes=vmem_limit),
        cost_estimate=cost,
    )(x, w1p, w2p, w3p, aux)


def init_params(key, input_dim, hidden_dim, output_dim):
    """Deterministic synthetic parameters (matching the PyTorch module shapes)."""
    ks = jax.random.split(key, 8)
    # Linear weights stored as [in, out] (i.e. PyTorch weight.T).
    w1 = jax.random.normal(ks[0], (input_dim, hidden_dim), jnp.float32) * 0.1
    b1 = jax.random.normal(ks[1], (1, hidden_dim), jnp.float32) * 0.1
    w2 = jax.random.normal(ks[2], (hidden_dim, hidden_dim), jnp.float32) * 0.1
    b2 = jax.random.normal(ks[3], (1, hidden_dim), jnp.float32) * 0.1
    w3 = jax.random.normal(ks[4], (hidden_dim, output_dim), jnp.float32) * 0.1
    b3 = jax.random.normal(ks[5], (1, output_dim), jnp.float32) * 0.1
    # BatchNorm affine params (non-trivial, deterministic).
    g1 = 1.0 + 0.1 * jax.random.normal(ks[6], (1, hidden_dim), jnp.float32)
    be1 = 0.1 * jax.random.normal(ks[7], (1, hidden_dim), jnp.float32)
    g2 = jnp.ones((1, hidden_dim), jnp.float32) * 0.9
    be2 = jnp.full((1, hidden_dim), 0.05, jnp.float32)
    return dict(w1=w1, b1=b1, g1=g1, be1=be1,
                w2=w2, b2=b2, g2=g2, be2=be2,
                w3=w3, b3=b3)


def fiber_optic_fnn5_ref(x, p):
    """Pure-JAX reference of the PyTorch forward (train-mode BN, with Linear biases)."""
    def bn_relu(z, g, b):
        m = jnp.mean(z, axis=0, keepdims=True)
        v = jnp.mean((z - m) ** 2, axis=0, keepdims=True)
        return jnp.maximum(g * (z - m) / jnp.sqrt(v + BN_EPS) + b, 0.0)
    h1 = bn_relu(x @ p["w1"] + p["b1"], p["g1"], p["be1"])
    h2 = bn_relu(h1 @ p["w2"] + p["b2"], p["g2"], p["be2"])
    return (h1 + h2) @ p["w3"] + p["b3"]


if __name__ == "__main__":
    B, input_dim, hidden_dim, output_dim = 8, 16, 32, 8

    key = jax.random.PRNGKey(0)
    kx, kp = jax.random.split(key)
    x = jax.random.normal(kx, (B, input_dim), jnp.float32)
    params = init_params(kp, input_dim, hidden_dim, output_dim)
    y_ref = fiber_optic_fnn5_ref(x, params)

    # f32 MXU operands: exact agreement with the f32 reference.
    prep_f32 = prepare_params(params, mxu_dtype=jnp.float32)
    y_f32 = jax.block_until_ready(fiber_optic_fnn5(x, prep_f32))
    assert y_f32.shape == (B, output_dim)
    assert jnp.allclose(y_f32, y_ref, rtol=1e-4, atol=1e-4), "f32 mismatch vs reference"

    # bf16 MXU operands (native MXU path, half the weight DMA bytes); looser tolerance.
    prep_bf16 = prepare_params(params, mxu_dtype=jnp.bfloat16)
    y_bf16 = jax.block_until_ready(fiber_optic_fnn5(x, prep_bf16))
    assert y_bf16.shape == (B, output_dim)
    assert jnp.allclose(y_bf16, y_ref, rtol=5e-2, atol=5e-2), "bf16 mismatch vs reference"

    print("KERNEL_OK")
</pallas_src>

<mosaic_0001>
module attributes {stable_mosaic.version = 11 : i64} {
  func.func @kernel(%arg0: memref<8x16xf32, #tpu.memory_space<vmem>>, %arg1: memref<16x128xf32, #tpu.memory_space<vmem>>, %arg2: memref<128x128xf32, #tpu.memory_space<vmem>>, %arg3: memref<128x8xf32, #tpu.memory_space<vmem>>, %arg4: memref<8x128xf32, #tpu.memory_space<vmem>>, %arg5: memref<8x8xf32, #tpu.memory_space<vmem>>) attributes {dimension_semantics = [], scalar_prefetch = 0 : i64, scratch_operands = 0 : i64, tpu.core_type = #tpu.core_type<tc>} {
    %c0 = arith.constant 0 : index
    %c0_0 = arith.constant 0 : index
    %0 = vector.load %arg4[%c0, %c0_0] : memref<8x128xf32, #tpu.memory_space<vmem>>, vector<1x128xf32>
    %c1 = arith.constant 1 : index
    %c0_1 = arith.constant 0 : index
    %1 = vector.load %arg4[%c1, %c0_1] : memref<8x128xf32, #tpu.memory_space<vmem>>, vector<1x128xf32>
    %c2 = arith.constant 2 : index
    %c0_2 = arith.constant 0 : index
    %2 = vector.load %arg4[%c2, %c0_2] : memref<8x128xf32, #tpu.memory_space<vmem>>, vector<1x128xf32>
    %c3 = arith.constant 3 : index
    %c0_3 = arith.constant 0 : index
    %3 = vector.load %arg4[%c3, %c0_3] : memref<8x128xf32, #tpu.memory_space<vmem>>, vector<1x128xf32>
    %c4 = arith.constant 4 : index
    %c0_4 = arith.constant 0 : index
    %4 = vector.load %arg4[%c4, %c0_4] : memref<8x128xf32, #tpu.memory_space<vmem>>, vector<1x128xf32>
    %5 = vector.extract_strided_slice %4 {offsets = [0, 0], sizes = [1, 8], strides = [1, 1]} : vector<1x128xf32> to vector<1x8xf32>
    %c0_5 = arith.constant 0 : index
    %c0_6 = arith.constant 0 : index
    %6 = vector.load %arg0[%c0_5, %c0_6] : memref<8x16xf32, #tpu.memory_space<vmem>>, vector<8x16xf32>
    %c0_7 = arith.constant 0 : index
    %c0_8 = arith.constant 0 : index
    %7 = vector.load %arg1[%c0_7, %c0_8] : memref<16x128xf32, #tpu.memory_space<vmem>>, vector<16x128xf32>
    %cst = arith.constant dense<0.000000e+00> : vector<8x128xf32>
    %8 = tpu.matmul %6, %7, %cst {dimension_numbers = #tpu.dot_dimension_numbers<[1], [0], [0], [1], [0, 0, 1, 1], [], []>} : vector<8x16xf32>, vector<16x128xf32>, vector<8x128xf32> -> vector<8x128xf32>
    %cst_9 = arith.constant dense<0.000000e+00> : vector<128xf32>
    %9 = vector.multi_reduction <add>, %8, %cst_9 [0] : vector<8x128xf32> to vector<128xf32>
    %10 = vector.shape_cast %9 : vector<128xf32> to vector<1x128xf32>
    %cst_10 = arith.constant 1.250000e-01 : f32
    %11 = vector.broadcast %cst_10 : f32 to vector<1x128xf32>
    %12 = arith.mulf %10, %11 : vector<1x128xf32>
    %13 = arith.mulf %8, %8 : vector<8x128xf32>
    %cst_11 = arith.constant dense<0.000000e+00> : vector<128xf32>
    %14 = vector.multi_reduction <add>, %13, %cst_11 [0] : vector<8x128xf32> to vector<128xf32>
    %15 = vector.shape_cast %14 : vector<128xf32> to vector<1x128xf32>
    %cst_12 = arith.constant 1.250000e-01 : f32
    %16 = vector.broadcast %cst_12 : f32 to vector<1x128xf32>
    %17 = arith.mulf %15, %16 : vector<1x128xf32>
    %18 = arith.mulf %12, %12 : vector<1x128xf32>
    %19 = arith.subf %17, %18 : vector<1x128xf32>
    %cst_13 = arith.constant 9.99999974E-6 : f32
    %20 = vector.broadcast %cst_13 : f32 to vector<1x128xf32>
    %21 = arith.addf %19, %20 : vector<1x128xf32>
    %22 = math.rsqrt %21 : vector<1x128xf32>
    %23 = arith.mulf %0, %22 : vector<1x128xf32>
    %24 = arith.mulf %23, %12 : vector<1x128xf32>
    %25 = arith.subf %1, %24 : vector<1x128xf32>
    %26 = vector.broadcast %23 : vector<1x128xf32> to vector<8x128xf32>
    %27 = arith.mulf %8, %26 : vector<8x128xf32>
    %28 = vector.broadcast %25 : vector<1x128xf32> to vector<8x128xf32>
    %29 = arith.addf %27, %28 : vector<8x128xf32>
    %cst_14 = arith.constant 0.000000e+00 : f32
    %30 = vector.broadcast %cst_14 : f32 to vector<8x128xf32>
    %31 = arith.maximumf %29, %30 : vector<8x128xf32>
    %c0_15 = arith.constant 0 : index
    %c0_16 = arith.constant 0 : index
    %32 = vector.load %arg2[%c0_15, %c0_16] : memref<128x128xf32, #tpu.memory_space<vmem>>, vector<128x128xf32>
    %cst_17 = arith.constant dense<0.000000e+00> : vector<8x128xf32>
    %33 = tpu.matmul %31, %32, %cst_17 {dimension_numbers = #tpu.dot_dimension_numbers<[1], [0], [0], [1], [0, 0, 1, 1], [], []>} : vector<8x128xf32>, vector<128x128xf32>, vector<8x128xf32> -> vector<8x128xf32>
    %cst_18 = arith.constant dense<0.000000e+00> : vector<128xf32>
    %34 = vector.multi_reduction <add>, %33, %cst_18 [0] : vector<8x128xf32> to vector<128xf32>
    %35 = vector.shape_cast %34 : vector<128xf32> to vector<1x128xf32>
    %cst_19 = arith.constant 1.250000e-01 : f32
    %36 = vector.broadcast %cst_19 : f32 to vector<1x128xf32>
    %37 = arith.mulf %35, %36 : vector<1x128xf32>
    %38 = arith.mulf %33, %33 : vector<8x128xf32>
    %cst_20 = arith.constant dense<0.000000e+00> : vector<128xf32>
    %39 = vector.multi_reduction <add>, %38, %cst_20 [0] : vector<8x128xf32> to vector<128xf32>
    %40 = vector.shape_cast %39 : vector<128xf32> to vector<1x128xf32>
    %cst_21 = arith.constant 1.250000e-01 : f32
    %41 = vector.broadcast %cst_21 : f32 to vector<1x128xf32>
    %42 = arith.mulf %40, %41 : vector<1x128xf32>
    %43 = arith.mulf %37, %37 : vector<1x128xf32>
    %44 = arith.subf %42, %43 : vector<1x128xf32>
    %cst_22 = arith.constant 9.99999974E-6 : f32
    %45 = vector.broadcast %cst_22 : f32 to vector<1x128xf32>
    %46 = arith.addf %44, %45 : vector<1x128xf32>
    %47 = math.rsqrt %46 : vector<1x128xf32>
    %48 = arith.mulf %2, %47 : vector<1x128xf32>
    %49 = arith.mulf %48, %37 : vector<1x128xf32>
    %50 = arith.subf %3, %49 : vector<1x128xf32>
    %51 = vector.broadcast %48 : vector<1x128xf32> to vector<8x128xf32>
    %52 = arith.mulf %33, %51 : vector<8x128xf32>
    %53 = vector.broadcast %50 : vector<1x128xf32> to vector<8x128xf32>
    %54 = arith.addf %52, %53 : vector<8x128xf32>
    %cst_23 = arith.constant 0.000000e+00 : f32
    %55 = vector.broadcast %cst_23 : f32 to vector<8x128xf32>
    %56 = arith.maximumf %54, %55 : vector<8x128xf32>
    %57 = arith.addf %31, %56 : vector<8x128xf32>
    %c0_24 = arith.constant 0 : index
    %c0_25 = arith.constant 0 : index
    %58 = vector.load %arg3[%c0_24, %c0_25] : memref<128x8xf32, #tpu.memory_space<vmem>>, vector<128x8xf32>
    %cst_26 = arith.constant dense<0.000000e+00> : vector<8x8xf32>
    %59 = tpu.matmul %57, %58, %cst_26 {dimension_numbers = #tpu.dot_dimension_numbers<[1], [0], [0], [1], [0, 0, 1, 1], [], []>} : vector<8x128xf32>, vector<128x8xf32>, vector<8x8xf32> -> vector<8x8xf32>
    %60 = vector.broadcast %5 : vector<1x8xf32> to vector<8x8xf32>
    %61 = arith.addf %59, %60 : vector<8x8xf32>
    %c0_27 = arith.constant 0 : index
    %c0_28 = arith.constant 0 : index
    %62 = vector.load %arg5[%c0_27, %c0_28] : memref<8x8xf32, #tpu.memory_space<vmem>>, vector<8x8xf32>
    tpu.vector_store %arg5[%c0_27, %c0_28], %61 {strides = array<i32>} : memref<8x8xf32, #tpu.memory_space<vmem>>, vector<8x8xf32>,
    return
  }
}

</mosaic_0001>

<bundles_post_ra>
// kernel: fiber_optic_fnn5.1
= control target key start
LH: loop header
LB: loop body
LE: loop exit
PB: predicated region body
PF: predicated region fallthrough
CT: control target
= control target key end

     0   :  { %10 = vsyncpa [#allocation3], 0  ;;  %s841_s0 = inlined_call_operand.hbm [shape: f32[8,16], index: 0, kind: input, shape index: {}]   ;;  %s842_s1 = inlined_call_operand.vmem [shape: f32[16,128], index: 1, kind: input, shape index: {}]   ;;  %s843_s2 = inlined_call_operand.vmem [shape: f32[128,128], index: 2, kind: input, shape index: {}]   ;;  %s844_s3 = inlined_call_operand.vmem [shape: f32[128,8], index: 3, kind: input, shape index: {}]   ;;  %s845_s4 = inlined_call_operand.hbm [shape: f32[8,128], index: 4, kind: input, shape index: {}]   ;;  %s846_s5 = inlined_call_operand.hbm [shape: f32[8,8], index: 5, kind: output, shape index: {}]  }
   0x1   :  { %11 = vsyncpa [#allocation6], 0 }
   0x2   :  { %12 = vsyncpa [#allocation4], 0  ;;  %s637_s18 = smov [#allocation2]   ;;  %s638_s20 = smov [#allocation5]  }
   0x3   :  { %s19_s19 = sshll.u32 %s637_s18, 4  ;;  %s35_s21 = sshll.u32 %s638_s20, 4  ;;  %s20_s19 = int_to_ptr.vmem [resolvable:$true] %s19_s19  ;;  %s36_s21 = int_to_ptr.vmem [resolvable:$true] %s35_s21 }
   0x4   :  { %s565_s24 = scalar_lea.hbm %s841_s0, 128 }
   0x5   :  { %p566_p0 = scmp.ne.s32.totalorder %s841_s0, %s565_s24  ;;  %p569_p1 = scmp.lt.u32.totalorder %s565_s24, %s841_s0 }
   0x7   :  { %p571_p2 = pnand %p569_p1, %p566_p0 }
   0x9   :  { %574 = shalt.err (!%p571_p2)
}
   0xa   :  { %s575_s29 = scalar_lea.vmem %s20_s19, 128  ;;  %p580_p4 = scmp.lt.s32.totalorder %s20_s19, %s20_s19 }
   0xb   :  { %p576_p3 = scmp.ne.s32.totalorder %s20_s19, %s575_s29  ;;  %p581_p5 = scmp.lt.s32.totalorder %s575_s29, %s575_s29 }
   0xd   :  { %p582_p6 = por %p581_p5, %p580_p4 }
   0xf   :  { %p583_p7 = pnand %p582_p6, %p576_p3 }
  0x11   :  { %586 = shalt.err (!%p583_p7)
}
  0x12   :  { %22 = dma.hbm_to_vmem [thread:$0]  %s841_s0, 128, %s20_s19, [#allocation3]  }
  0x13   :  { %s587_s9 = scalar_lea.hbm %s845_s4, 128 }
  0x14   :  { %p588_p8 = scmp.ne.s32.totalorder %s845_s4, %s587_s9  ;;  %p591_p9 = scmp.lt.u32.totalorder %s587_s9, %s845_s4 }
  0x16   :  { %p593_p10 = pnand %p591_p9, %p588_p8 }
  0x18   :  { %596 = shalt.err (!%p593_p10)
}
  0x19   :  { %s597_s14 = scalar_lea.vmem %s36_s21, 128  ;;  %p602_p12 = scmp.lt.s32.totalorder %s36_s21, %s36_s21 }
  0x1a   :  { %p598_p11 = scmp.ne.s32.totalorder %s36_s21, %s597_s14  ;;  %p603_p13 = scmp.lt.s32.totalorder %s597_s14, %s597_s14 }
  0x1c   :  { %p604_p0 = por %p603_p13, %p602_p12 }
  0x1e   :  { %p605_p1 = pnand %p604_p0, %p598_p11 }
  0x20   :  { %608 = shalt.err (!%p605_p1)
}
  0x21   :  { %38 = dma.hbm_to_vmem [thread:$0]  %s845_s4, 128, %s36_s21, [#allocation6]  }
  0x22   :  { %631 = dma.done.wait [#allocation3], 128  }
  0x23   :  { %632 = vsyncadd [#allocation3], 4294967168 }
  0x24   :  { %633 = dma.done.wait [#allocation6], 128  }
  0x25   :  { %634 = vsyncadd [#allocation6], 4294967168  ;;  %v639_v0 = vmov 0.0|0.0   ;;  %vm640_vm0 = vmmov 0   ;;  %v641_v1 = vmov 0.0   ;;  %v51_v2 = vld [vmem:[%s842_s1] sm:$0xff]  ;;  %v149_v50 = vlaneseq }
  0x26   :  { %504 = vmatprep.subr.bf16.mxu0 %v639_v0  ;;  %431 = vmatprep.mubr.msk.f32.mxu0 %vm640_vm0, %v641_v1  ;;  %v52_v3 = vld [vmem:[%s842_s1 + $0x8] sm:$0xff]  ;;  %v50_v5 = vld [vmem:[#allocation2] sm:$0xff]  ;;  %vm53_vm1 = vcmask 130048   ;;  %v162_v9 = vld [vmem:[%s843_s2 + $0x10] sm:$0xff]  ;;  %vm370_vm2 = vcmask 64512  }
  0x27   :  { %507 = vmatprep.subr.bf16.mxu1 %v639_v0  ;;  %466 = vmatprep.mubr.msk.f32.mxu1 %vm640_vm0, %v641_v1  ;;  %v505_v4 = vpack.c.bf16 %v52_v3, %v51_v2  ;;  %v160_v6 = vld [vmem:[%s843_s2] sm:$0xff]  ;;  %v161_v7 = vld [vmem:[%s843_s2 + $0x8] sm:$0xff]  ;;  %v163_v10 = vld [vmem:[%s843_s2 + $0x18] sm:$0xff]  ;;  %v150_v51 = vshrl.u32 %v149_v50, 7 }
  0x28   :  { %v508_v8 = vpack.c.bf16 %v161_v7, %v160_v6  ;;  %v511_v11 = vpack.c.bf16 %v163_v10, %v162_v9  ;;  %v164_v12 = vld [vmem:[%s843_s2 + $0x20] sm:$0xff]  ;;  %v165_v13 = vld [vmem:[%s843_s2 + $0x28] sm:$0xff]  ;;  %v166_v15 = vld [vmem:[%s843_s2 + $0x30] sm:$0xff] }
  0x29   :  { %506 = vmatpush3.bf16.msra.mxu0 %v505_v4  ;;  %v514_v14 = vpack.c.bf16 %v165_v13, %v164_v12  ;;  %v167_v16 = vld [vmem:[%s843_s2 + $0x38] sm:$0xff]  ;;  %v168_v18 = vld [vmem:[%s843_s2 + $0x40] sm:$0xff]  ;;  %v169_v19 = vld [vmem:[%s843_s2 + $0x48] sm:$0xff]  ;;  %v761_v53 = vsub.s32 0, %v150_v51 }
  0x2a   :  { %531 = vmatprep.subr.bf16.mxu0 %v639_v0  ;;  %509 = vmatpush3.bf16.msra.mxu1 %v508_v8  ;;  %v517_v17 = vpack.c.bf16 %v167_v16, %v166_v15  ;;  %v520_v20 = vpack.c.bf16 %v169_v19, %v168_v18  ;;  %v170_v21 = vld [vmem:[%s843_s2 + $0x50] sm:$0xff]  ;;  %v171_v22 = vld [vmem:[%s843_s2 + $0x58] sm:$0xff]  ;;  %v172_v24 = vld [vmem:[%s843_s2 + $0x60] sm:$0xff] }
  0x2b   :  { %510 = vmatprep.subr.bf16.mxu1 %v639_v0  ;;  %v523_v23 = vpack.c.bf16 %v171_v22, %v170_v21  ;;  %v173_v25 = vld [vmem:[%s843_s2 + $0x68] sm:$0xff]  ;;  %v174_v27 = vld [vmem:[%s843_s2 + $0x70] sm:$0xff]  ;;  %v175_v28 = vld [vmem:[%s843_s2 + $0x78] sm:$0xff] }
  0x2c   :  { %432 = vmatmul.mubr.msk.f32.vlgmr.msra.gmra.mrb[0].mxu0 %vm53_vm1, %v50_v5  ;;  %v526_v26 = vpack.c.bf16 %v173_v25, %v172_v24  ;;  %v529_v29 = vpack.c.bf16 %v175_v28, %v174_v27  ;;  %v45_v52 = vld [vmem:[#allocation5] sm:$0x1]  ;;  %v46_v56 = vld [vmem:[#allocation5 + $0x1] sm:$0x1]  ;;  %v282_v4 = vld [vmem:[%s844_s3 + $0x10] sm:$0xff] }
  0x2d   :  { %501 = vmatprep.mubr.msk.f32.mxu0 %vm640_vm0, %v641_v1  ;;  %v280_v1 = vld [vmem:[%s844_s3] sm:$0xff]  ;;  %v281_v2 = vld [vmem:[%s844_s3 + $0x8] sm:$0xff]  ;;  %v283_v5 = vld [vmem:[%s844_s3 + $0x18] sm:$0xff] }
  0x2e   :  { %512 = vmatpush3.bf16.msra.mxu1 %v511_v11  ;;  %v532_v3 = vpack.c.bf16 %v281_v2, %v280_v1  ;;  %v535_v6 = vpack.c.bf16 %v283_v5, %v282_v4  ;;  %v284_v7 = vld [vmem:[%s844_s3 + $0x20] sm:$0xff]  ;;  %v285_v8 = vld [vmem:[%s844_s3 + $0x28] sm:$0xff]  ;;  %v286_v10 = vld [vmem:[%s844_s3 + $0x30] sm:$0xff] }
  0x2f   :  { %513 = vmatprep.subr.bf16.mxu1 %v639_v0  ;;  %v538_v9 = vpack.c.bf16 %v285_v8, %v284_v7  ;;  %v287_v11 = vld [vmem:[%s844_s3 + $0x38] sm:$0xff]  ;;  %v288_v13 = vld [vmem:[%s844_s3 + $0x40] sm:$0xff]  ;;  %v290_v16 = vld [vmem:[%s844_s3 + $0x50] sm:$0xff] }
  0x30   :  { %533 = vmatpush3.bf16.msra.mxu0 %v532_v3  ;;  %v541_v12 = vpack.c.bf16 %v287_v11, %v286_v10  ;;  %v292_v19 = vld [vmem:[%s844_s3 + $0x60] sm:$0xff]  ;;  %v294_v22 = vld [vmem:[%s844_s3 + $0x70] sm:$0xff] }
  0x31   :  { %534 = vmatprep.subr.bf16.mxu0 %v639_v0 }
  0x32   :  { %515 = vmatpush3.bf16.msra.mxu1 %v514_v14  ;;  %v289_v14 = vld [vmem:[%s844_s3 + $0x48] sm:$0xff] }
  0x33   :  { %516 = vmatprep.subr.bf16.mxu1 %v639_v0  ;;  %v544_v15 = vpack.c.bf16 %v289_v14, %v288_v13 }
  0x34   :  { %536 = vmatpush3.bf16.msra.mxu0 %v535_v6 }
  0x35   :  { %537 = vmatprep.subr.bf16.mxu0 %v639_v0 }
  0x36   :  { %518 = vmatpush3.bf16.msra.mxu1 %v517_v17  ;;  %v291_v17 = vld [vmem:[%s844_s3 + $0x58] sm:$0xff] }
  0x37   :  { %519 = vmatprep.subr.bf16.mxu1 %v639_v0  ;;  %v547_v18 = vpack.c.bf16 %v291_v17, %v290_v16 }
  0x38   :  { %539 = vmatpush3.bf16.msra.mxu0 %v538_v9 }
  0x39   :  { %540 = vmatprep.subr.bf16.mxu0 %v639_v0 }
  0x3a   :  { %521 = vmatpush3.bf16.msra.mxu1 %v520_v20  ;;  %v293_v20 = vld [vmem:[%s844_s3 + $0x68] sm:$0xff] }
  0x3b   :  { %522 = vmatprep.subr.bf16.mxu1 %v639_v0  ;;  %v550_v21 = vpack.c.bf16 %v293_v20, %v292_v19 }
  0x3c   :  { %542 = vmatpush3.bf16.msra.mxu0 %v541_v12 }
  0x3d   :  { %543 = vmatprep.subr.bf16.mxu0 %v639_v0 }
  0x3e   :  { %524 = vmatpush3.bf16.msra.mxu1 %v523_v23  ;;  %v295_v23 = vld [vmem:[%s844_s3 + $0x78] sm:$0xff]  ;;  %s642_s3 = smov [#allocation7]  }
  0x3f   :  { %525 = vmatprep.subr.bf16.mxu1 %v639_v0  ;;  %v553_v24 = vpack.c.bf16 %v295_v23, %v294_v22  ;;  %s378_s24 = sshll.u32 %s642_s3, 4  ;;  %s379_s24 = int_to_ptr.vmem [resolvable:$true] %s378_s24 }
  0x40   :  { %545 = vmatpush3.bf16.msra.mxu0 %v544_v15  ;;  %s609_s25 = scalar_lea.vmem %s379_s24, 128  ;;  %p614_p3 = scmp.lt.s32.totalorder %s379_s24, %s379_s24 }
  0x41   :  { %546 = vmatprep.subr.bf16.mxu0 %v639_v0  ;;  %p610_p2 = scmp.ne.s32.totalorder %s379_s24, %s609_s25  ;;  %p615_p4 = scmp.lt.s32.totalorder %s609_s25, %s609_s25 }
  0x42   :  { %527 = vmatpush3.bf16.msra.mxu1 %v526_v26 }
  0x43   :  { %528 = vmatprep.subr.bf16.mxu1 %v639_v0  ;;  %p616_p5 = por %p615_p4, %p614_p3 }
  0x44   :  { %548 = vmatpush3.bf16.msra.mxu0 %v547_v18 }
  0x45   :  { %549 = vmatprep.subr.bf16.mxu0 %v639_v0  ;;  %p617_p6 = pnand %p616_p5, %p610_p2 }
  0x46   :  { %530 = vmatpush3.bf16.msra.mxu1 %v529_v29 }
  0x48   :  { %551 = vmatpush3.bf16.msra.mxu0 %v550_v21 }
  0x49   :  { %552 = vmatprep.subr.bf16.mxu0 %v639_v0 }
  0x4c   :  { %554 = vmatpush3.bf16.msra.mxu0 %v553_v24 }
  0xff   :  { %v123_v30 = vpop.f32.mrb[0].mxu0 }
 0x100   :  { %v127_v31 = vrot.slane %v123_v30, 4  ;;  %v134_v32 = vmul.f32 %v123_v30, %v123_v30  ;;  %v433_v33 = vpop.f32.mrb[1].mxu0 }
 0x102   :  { %v128_v34 = vadd.f32 %v127_v31, %v123_v30  ;;  %v135_v35 = vrot.slane %v134_v32, 4 }
 0x104   :  { %v129_v36 = vrot.slane %v128_v34, 2  ;;  %v136_v37 = vadd.f32 %v135_v35, %v134_v32 }
 0x106   :  { %v130_v38 = vadd.f32 %v129_v36, %v128_v34  ;;  %v137_v39 = vrot.slane %v136_v37, 2 }
 0x108   :  { %v131_v40 = vrot.slane %v130_v38, 1  ;;  %v138_v41 = vadd.f32 %v137_v39, %v136_v37 }
 0x10a   :  { %v132_v42 = vadd.f32 %v131_v40, %v130_v38  ;;  %v139_v43 = vrot.slane %v138_v41, 1 }
 0x10c   :  { %v133_v44 = vmul.f32 0.125, %v132_v42  ;;  %v140_v45 = vadd.f32 %v139_v43, %v138_v41 }
 0x10e   :  { %v141_v46 = vmul.f32 0.125, %v140_v45  ;;  %v142_v47 = vmul.f32 %v133_v44, %v133_v44 }
 0x110   :  { %v143_v48 = vsub.f32 %v141_v46, %v142_v47  ;;  %v48_v47 = vld [vmem:[#allocation5 + $0x3] sm:$0x1] }
 0x112   :  { %v144_v49 = vadd.f32 1e-05, %v143_v48 }
 0x114   :  { %561 = vrsqrt.f32 %v144_v49 }
 0x11e   :  { %v562_v54 = vpop.eup %561 }
 0x11f   :  { %v146_v55 = vmul.f32 %v562_v54, %v45_v52 }
 0x121   :  { %v152_v57 = vrot.slane %v146_v55, %v761_v53  ;;  %v147_v58 = vmul.f32 %v146_v55, %v133_v44  ;;  %v47_v44 = vld [vmem:[#allocation5 + $0x2] sm:$0x1] }
 0x123   :  { %v148_v59 = vsub.f32 %v46_v56, %v147_v58  ;;  %v153_v60 = vmul.f32 %v152_v57, %v123_v30  ;;  %v389_v57 = vld [vmem:[#allocation5 + $0x4] ss:$0 sm:$0xff] }
 0x125   :  { %v157_v61 = vrot.slane %v148_v59, %v761_v53 }
 0x127   :  { %v765_v62 = vadd.f32 %v157_v61, %v153_v60 }
 0x129   :  { %v159_v63 = vmax.f32 %v765_v62, 0.0 }
 0x12b   :  { %467 = vmatmul.mubr.f32.vlgmr.msra.gmra.mrb[0].mxu1 %v159_v63 }
 0x1fe   :  { %v242_v25 = vpop.f32.mrb[0].mxu1 }
 0x1ff   :  { %v246_v26 = vrot.slane %v242_v25, 4  ;;  %v253_v27 = vmul.f32 %v242_v25, %v242_v25  ;;  %v468_v28 = vpop.f32.mrb[1].mxu1 }
 0x201   :  { %v247_v29 = vadd.f32 %v246_v26, %v242_v25  ;;  %v254_v30 = vrot.slane %v253_v27, 4 }
 0x203   :  { %v248_v31 = vrot.slane %v247_v29, 2  ;;  %v255_v32 = vadd.f32 %v254_v30, %v253_v27 }
 0x205   :  { %v249_v33 = vadd.f32 %v248_v31, %v247_v29  ;;  %v256_v0 = vrot.slane %v255_v32, 2 }
 0x207   :  { %v250_v34 = vrot.slane %v249_v33, 1  ;;  %v257_v35 = vadd.f32 %v256_v0, %v255_v32 }
 0x209   :  { %v251_v36 = vadd.f32 %v250_v34, %v249_v33  ;;  %v258_v37 = vrot.slane %v257_v35, 1 }
 0x20b   :  { %v252_v38 = vmul.f32 0.125, %v251_v36  ;;  %v259_v39 = vadd.f32 %v258_v37, %v257_v35 }
 0x20d   :  { %v260_v40 = vmul.f32 0.125, %v259_v39  ;;  %v261_v41 = vmul.f32 %v252_v38, %v252_v38 }
 0x20f   :  { %v262_v42 = vsub.f32 %v260_v40, %v261_v41 }
 0x211   :  { %v263_v43 = vadd.f32 1e-05, %v262_v42 }
 0x213   :  { %563 = vrsqrt.f32 %v263_v43 }
 0x21d   :  { %v564_v45 = vpop.eup %563 }
 0x21e   :  { %v265_v46 = vmul.f32 %v564_v45, %v47_v44 }
 0x220   :  { %v266_v48 = vmul.f32 %v265_v46, %v252_v38  ;;  %v271_v49 = vrot.slane %v265_v46, %v761_v53 }
 0x222   :  { %v267_v50 = vsub.f32 %v48_v47, %v266_v48  ;;  %v272_v51 = vmul.f32 %v271_v49, %v242_v25 }
 0x224   :  { %v276_v52 = vrot.slane %v267_v50, %v761_v53 }
 0x226   :  { %v277_v54 = vadd.f32 %v276_v52, %v272_v51 }
 0x228   :  { %v278_v55 = vmax.f32 %v277_v54, 0.0 }
 0x22a   :  { %v279_v56 = vadd.f32 %v278_v55, %v159_v63 }
 0x22c   :  { %502 = vmatmul.mubr.f32.vlgmr.msra.gmra.mrb[2].mxu0 %v279_v56 }
 0x2ff   :  { %v366_v58 = vpop.f32.mrb[2].mxu0 }
 0x300   :  { %v367_v59 = vadd.f32 %v389_v57, %v366_v58  ;;  %v503_v60 = vpop.f32.mrb[3].mxu0 }
 0x302   :  { %371 = vst.msk [vmem:[#allocation7] sm:$0xff] %vm370_vm2, %v367_v59 }
 0x303   :  { %620 = shalt.err (!%p617_p6)
}
 0x304   :  { %s621_s28 = scalar_lea.hbm %s846_s5, 128 }
 0x305   :  { %p622_p7 = scmp.ne.s32.totalorder %s846_s5, %s621_s28  ;;  %p625_p8 = scmp.lt.u32.totalorder %s621_s28, %s846_s5 }
 0x307   :  { %p627_p9 = pnand %p625_p8, %p622_p7 }
 0x309   :  { %630 = shalt.err (!%p627_p9)
}
 0x30a   :  { %381 = dma.vmem_to_hbm [thread:$0]  %s379_s24, 128, %s846_s5, [#allocation4]  }
 0x30b   :  { %635 = dma.done.wait [#allocation4], 128  }
 0x30c   :  { %636 = vsyncadd [#allocation4], 4294967168 }
 0x30d   :  { %385 = vsyncpa [#allocation3], 1 }
 0x30e   :  { %386 = vsyncpa [#allocation6], 1 }
 0x30f   :  { %387 = vsyncpa [#allocation4], 1 }

</bundles_post_ra>
